<compile_context>
chip_gen: v7x
topology: tpu7x:2x2x1
jax: 0.10.0
libtpu: 0.0.40
codegen_flags: <defaults>
</compile_context>

<pallas_src>
import functools

import jax
import jax.numpy as jnp
from jax import lax
from jax.experimental import pallas as pl
from jax.experimental.pallas import tpu as pltpu

K = 3        # kernel_size
STRIDE = 1
PAD = 0
DIL = 1


def _saconv_kernel(x_ref, m_ref, w_ref, b_ref, y_ref, mo_ref, patch_ref, *, width):
    # x_ref    : (1, Cin, H*W)     flattened spatial, lane dim = H*W
    # m_ref    : (1, 1,   H*W)
    # w_ref    : (Cout, K*K*Cin)   im2col weight matrix (host-prepared)
    # b_ref    : (Cout, 1)
    # y_ref    : (1, Cout, L)      L = (Ho-1)*W + Wo  (lane-dense output)
    # mo_ref   : (1, 1,   L)
    # patch_ref: (K*K*Cin, L)      VMEM scratch: im2col patch matrix
    cin = x_ref.shape[1]
    L = y_ref.shape[2]

    xm = x_ref[0] * m_ref[0]                  # (Cin, H*W): mask bcast over channels
    mflat = m_ref[0]                          # (1, H*W)

    # Build the im2col patch matrix (one store per tap) and the 3x3 max-pool
    # of the mask (full-lane-width VPU max) in the same statically unrolled
    # tap loop.  All slice offsets are static -> pure lane/sublane shifts.
    mpool = mflat[:, 0:L]
    for kh in range(K):
        for kw in range(K):
            t = kh * K + kw
            off = kh * width + kw             # static lane offset of this tap
            patch_ref[t * cin:(t + 1) * cin, :] = xm[:, off:off + L]
            if t:
                mpool = jnp.maximum(mpool, mflat[:, off:off + L])

    # Single MXU matmul: (Cout, K*K*Cin) @ (K*K*Cin, L) -> (Cout, L),
    # result already lane-dense; bias broadcasts over lanes in f32.
    acc = jnp.dot(w_ref[...], patch_ref[...], preferred_element_type=jnp.float32)
    y_ref[0] = (acc + b_ref[...]).astype(y_ref.dtype)
    mo_ref[0] = mpool.astype(mo_ref.dtype)


def saconv_forward(x_nchw, m_nchw, weight_oihw, bias):
    """x: (N,Cin,H,W), m: (N,1,H,W), weight: (Cout,Cin,K,K) OIHW, bias: (Cout,)."""
    N, Cin, H, W = x_nchw.shape
    Cout = weight_oihw.shape[0]
    Ho = (H + 2 * PAD - DIL * (K - 1) - 1) // STRIDE + 1
    Wo = (W + 2 * PAD - DIL * (K - 1) - 1) // STRIDE + 1
    L = (Ho - 1) * W + Wo            # flattened output length (stride-W rows)

    # Free, layout-preserving reshapes — no HBM transposes of activations.
    x_flat = x_nchw.reshape(N, Cin, H * W)
    m_flat = m_nchw.reshape(N, 1, H * W)
    # Tiny host-side weight/bias reshuffle; column order (kh, kw, cin) matches
    # the patch construction order inside the kernel.
    w2 = jnp.transpose(weight_oihw, (0, 2, 3, 1)).reshape(Cout, K * K * Cin)
    b2 = bias.reshape(Cout, 1).astype(jnp.float32)

    kernel = functools.partial(_saconv_kernel, width=W)

    y_raw, mo_raw = pl.pallas_call(
        kernel,
        out_shape=(jax.ShapeDtypeStruct((N, Cout, L), x_nchw.dtype),
                   jax.ShapeDtypeStruct((N, 1, L), m_nchw.dtype)),
        grid_spec=pltpu.PrefetchScalarGridSpec(
            num_scalar_prefetch=0,
            grid=(N,),                                   # one batch element / step
            in_specs=[
                pl.BlockSpec((1, Cin, H * W), lambda n: (n, 0, 0)),
                pl.BlockSpec((1, 1, H * W), lambda n: (n, 0, 0)),
                pl.BlockSpec((Cout, K * K * Cin), lambda n: (0, 0)),   # VMEM-resident
                pl.BlockSpec((Cout, 1), lambda n: (0, 0)),             # VMEM-resident
            ],
            out_specs=[
                pl.BlockSpec((1, Cout, L), lambda n: (n, 0, 0)),
                pl.BlockSpec((1, 1, L), lambda n: (n, 0, 0)),
            ],
            scratch_shapes=[pltpu.VMEM((K * K * Cin, L), x_nchw.dtype)],
        ),
        compiler_params=pltpu.CompilerParams(
            dimension_semantics=("parallel",)),
    )(x_flat, m_flat, w2, b2)

    # Unflatten: valid outputs sit at flat positions p = ho*W + wo, wo < Wo.
    # Pad K-1 tail columns, reshape (free) and slice — a cheap contiguous copy,
    # not a transpose.
    pad = Ho * W - L
    y = jnp.pad(y_raw, ((0, 0), (0, 0), (0, pad))).reshape(N, Cout, Ho, W)[:, :, :, :Wo]
    mo = jnp.pad(mo_raw, ((0, 0), (0, 0), (0, pad))).reshape(N, 1, Ho, W)[:, :, :, :Wo]
    return y, mo


def saconv_reference(x_nchw, m_nchw, weight_oihw, bias):
    xm = x_nchw * m_nchw
    y = lax.conv_general_dilated(
        xm, weight_oihw, window_strides=(STRIDE, STRIDE), padding="VALID",
        rhs_dilation=(DIL, DIL),
        dimension_numbers=("NCHW", "OIHW", "NCHW"))
    y = y + bias.reshape(1, -1, 1, 1)
    m = lax.reduce_window(m_nchw, -jnp.inf, lax.max,
                          (1, 1, K, K), (1, 1, STRIDE, STRIDE), "VALID")
    return y, m


if __name__ == "__main__":
    key = jax.random.PRNGKey(0)
    k_x, k_m, k_w, k_b = jax.random.split(key, 4)

    N, Cin, Cout, H, W = 2, 4, 8, 16, 16

    x = jax.random.normal(k_x, (N, Cin, H, W), dtype=jnp.float32)
    m = (jax.random.uniform(k_m, (N, 1, H, W)) > 0.4).astype(jnp.float32)

    # kaiming_normal_(mode='fan_out', nonlinearity='relu'): std = sqrt(2/(Cout*K*K))
    fan_out = Cout * K * K
    weight = jax.random.normal(k_w, (Cout, Cin, K, K), dtype=jnp.float32) * jnp.sqrt(2.0 / fan_out)
    # The module initializes bias to zeros; use small nonzero values here so the
    # bias path is actually exercised by the check.
    bias = 0.1 * jax.random.normal(k_b, (Cout,), dtype=jnp.float32)

    y, m_out = saconv_forward(x, m, weight, bias)
    y = jax.block_until_ready(y)
    m_out = jax.block_until_ready(m_out)

    y_ref, m_ref_out = saconv_reference(x, m, weight, bias)
    assert y.shape == y_ref.shape and m_out.shape == m_ref_out.shape
    assert jnp.allclose(y, y_ref, atol=1e-4, rtol=1e-4)
    assert jnp.allclose(m_out, m_ref_out, atol=1e-6)

    print("KERNEL_OK")
</pallas_src>

<mosaic_0001>
module attributes {stable_mosaic.version = 11 : i64} {
  func.func @_saconv_kernel(%arg0: i32, %arg1: memref<1x4x256xf32, #tpu.memory_space<vmem>>, %arg2: memref<1x1x256xf32, #tpu.memory_space<vmem>>, %arg3: memref<8x36xf32, #tpu.memory_space<vmem>>, %arg4: memref<8x1xf32, #tpu.memory_space<vmem>>, %arg5: memref<1x8x222xf32, #tpu.memory_space<vmem>>, %arg6: memref<1x1x222xf32, #tpu.memory_space<vmem>>, %arg7: memref<36x222xf32, #tpu.memory_space<vmem>>) attributes {dimension_semantics = [#tpu.dimension_semantics<parallel>], iteration_bounds = array<i64: 2>, scalar_prefetch = 0 : i64, scratch_operands = 1 : i64, tpu.core_type = #tpu.core_type<tc>, window_params = [{transform_indices = @transform_0, window_bounds = array<i64: 1, 4, 256>}, {transform_indices = @transform_1, window_bounds = array<i64: 1, 1, 256>}, {pipeline_mode = #tpu.pipeline_mode<synchronous>, transform_indices = @transform_2, window_bounds = array<i64: 8, 36>}, {pipeline_mode = #tpu.pipeline_mode<synchronous>, transform_indices = @transform_3, window_bounds = array<i64: 8, 1>}, {transform_indices = @transform_4, window_bounds = array<i64: 1, 8, 222>}, {transform_indices = @transform_5, window_bounds = array<i64: 1, 1, 222>}]} {
    %c0 = arith.constant 0 : index
    %c0_0 = arith.constant 0 : index
    %c0_1 = arith.constant 0 : index
    %0 = vector.load %arg1[%c0, %c0_0, %c0_1] : memref<1x4x256xf32, #tpu.memory_space<vmem>>, vector<1x4x256xf32>
    %1 = vector.shape_cast %0 : vector<1x4x256xf32> to vector<4x256xf32>
    %c0_2 = arith.constant 0 : index
    %c0_3 = arith.constant 0 : index
    %c0_4 = arith.constant 0 : index
    %2 = vector.load %arg2[%c0_2, %c0_3, %c0_4] : memref<1x1x256xf32, #tpu.memory_space<vmem>>, vector<1x1x256xf32>
    %3 = vector.shape_cast %2 : vector<1x1x256xf32> to vector<1x256xf32>
    %4 = vector.broadcast %3 : vector<1x256xf32> to vector<4x256xf32>
    %5 = arith.mulf %1, %4 : vector<4x256xf32>
    %c0_5 = arith.constant 0 : index
    %c0_6 = arith.constant 0 : index
    %c0_7 = arith.constant 0 : index
    %6 = vector.load %arg2[%c0_5, %c0_6, %c0_7] : memref<1x1x256xf32, #tpu.memory_space<vmem>>, vector<1x1x256xf32>
    %7 = vector.shape_cast %6 : vector<1x1x256xf32> to vector<1x256xf32>
    %8 = vector.extract_strided_slice %7 {offsets = [0, 0], sizes = [1, 222], strides = [1, 1]} : vector<1x256xf32> to vector<1x222xf32>
    %9 = vector.extract_strided_slice %5 {offsets = [0, 0], sizes = [4, 222], strides = [1, 1]} : vector<4x256xf32> to vector<4x222xf32>
    %c0_8 = arith.constant 0 : index
    %c0_9 = arith.constant 0 : index
    %10 = vector.load %arg7[%c0_8, %c0_9] : memref<36x222xf32, #tpu.memory_space<vmem>>, vector<4x222xf32>
    tpu.vector_store %arg7[%c0_8, %c0_9], %9 {strides = array<i32>} : memref<36x222xf32, #tpu.memory_space<vmem>>, vector<4x222xf32>,
    %11 = vector.extract_strided_slice %5 {offsets = [0, 1], sizes = [4, 222], strides = [1, 1]} : vector<4x256xf32> to vector<4x222xf32>
    %c4 = arith.constant 4 : index
    %c0_10 = arith.constant 0 : index
    %12 = vector.load %arg7[%c4, %c0_10] : memref<36x222xf32, #tpu.memory_space<vmem>>, vector<4x222xf32>
    tpu.vector_store %arg7[%c4, %c0_10], %11 {strides = array<i32>} : memref<36x222xf32, #tpu.memory_space<vmem>>, vector<4x222xf32>,
    %13 = vector.extract_strided_slice %7 {offsets = [0, 1], sizes = [1, 222], strides = [1, 1]} : vector<1x256xf32> to vector<1x222xf32>
    %14 = arith.maximumf %8, %13 : vector<1x222xf32>
    %15 = vector.extract_strided_slice %5 {offsets = [0, 2], sizes = [4, 222], strides = [1, 1]} : vector<4x256xf32> to vector<4x222xf32>
    %c8 = arith.constant 8 : index
    %c0_11 = arith.constant 0 : index
    %16 = vector.load %arg7[%c8, %c0_11] : memref<36x222xf32, #tpu.memory_space<vmem>>, vector<4x222xf32>
    tpu.vector_store %arg7[%c8, %c0_11], %15 {strides = array<i32>} : memref<36x222xf32, #tpu.memory_space<vmem>>, vector<4x222xf32>,
    %17 = vector.extract_strided_slice %7 {offsets = [0, 2], sizes = [1, 222], strides = [1, 1]} : vector<1x256xf32> to vector<1x222xf32>
    %18 = arith.maximumf %14, %17 : vector<1x222xf32>
    %19 = vector.extract_strided_slice %5 {offsets = [0, 16], sizes = [4, 222], strides = [1, 1]} : vector<4x256xf32> to vector<4x222xf32>
    %c12 = arith.constant 12 : index
    %c0_12 = arith.constant 0 : index
    %20 = vector.load %arg7[%c12, %c0_12] : memref<36x222xf32, #tpu.memory_space<vmem>>, vector<4x222xf32>
    tpu.vector_store %arg7[%c12, %c0_12], %19 {strides = array<i32>} : memref<36x222xf32, #tpu.memory_space<vmem>>, vector<4x222xf32>,
    %21 = vector.extract_strided_slice %7 {offsets = [0, 16], sizes = [1, 222], strides = [1, 1]} : vector<1x256xf32> to vector<1x222xf32>
    %22 = arith.maximumf %18, %21 : vector<1x222xf32>
    %23 = vector.extract_strided_slice %5 {offsets = [0, 17], sizes = [4, 222], strides = [1, 1]} : vector<4x256xf32> to vector<4x222xf32>
    %c16 = arith.constant 16 : index
    %c0_13 = arith.constant 0 : index
    %24 = vector.load %arg7[%c16, %c0_13] : memref<36x222xf32, #tpu.memory_space<vmem>>, vector<4x222xf32>
    tpu.vector_store %arg7[%c16, %c0_13], %23 {strides = array<i32>} : memref<36x222xf32, #tpu.memory_space<vmem>>, vector<4x222xf32>,
    %25 = vector.extract_strided_slice %7 {offsets = [0, 17], sizes = [1, 222], strides = [1, 1]} : vector<1x256xf32> to vector<1x222xf32>
    %26 = arith.maximumf %22, %25 : vector<1x222xf32>
    %27 = vector.extract_strided_slice %5 {offsets = [0, 18], sizes = [4, 222], strides = [1, 1]} : vector<4x256xf32> to vector<4x222xf32>
    %c20 = arith.constant 20 : index
    %c0_14 = arith.constant 0 : index
    %28 = vector.load %arg7[%c20, %c0_14] : memref<36x222xf32, #tpu.memory_space<vmem>>, vector<4x222xf32>
    tpu.vector_store %arg7[%c20, %c0_14], %27 {strides = array<i32>} : memref<36x222xf32, #tpu.memory_space<vmem>>, vector<4x222xf32>,
    %29 = vector.extract_strided_slice %7 {offsets = [0, 18], sizes = [1, 222], strides = [1, 1]} : vector<1x256xf32> to vector<1x222xf32>
    %30 = arith.maximumf %26, %29 : vector<1x222xf32>
    %31 = vector.extract_strided_slice %5 {offsets = [0, 32], sizes = [4, 222], strides = [1, 1]} : vector<4x256xf32> to vector<4x222xf32>
    %c24 = arith.constant 24 : index
    %c0_15 = arith.constant 0 : index
    %32 = vector.load %arg7[%c24, %c0_15] : memref<36x222xf32, #tpu.memory_space<vmem>>, vector<4x222xf32>
    tpu.vector_store %arg7[%c24, %c0_15], %31 {strides = array<i32>} : memref<36x222xf32, #tpu.memory_space<vmem>>, vector<4x222xf32>,
    %33 = vector.extract_strided_slice %7 {offsets = [0, 32], sizes = [1, 222], strides = [1, 1]} : vector<1x256xf32> to vector<1x222xf32>
    %34 = arith.maximumf %30, %33 : vector<1x222xf32>
    %35 = vector.extract_strided_slice %5 {offsets = [0, 33], sizes = [4, 222], strides = [1, 1]} : vector<4x256xf32> to vector<4x222xf32>
    %c28 = arith.constant 28 : index
    %c0_16 = arith.constant 0 : index
    %36 = vector.load %arg7[%c28, %c0_16] : memref<36x222xf32, #tpu.memory_space<vmem>>, vector<4x222xf32>
    tpu.vector_store %arg7[%c28, %c0_16], %35 {strides = array<i32>} : memref<36x222xf32, #tpu.memory_space<vmem>>, vector<4x222xf32>,
    %37 = vector.extract_strided_slice %7 {offsets = [0, 33], sizes = [1, 222], strides = [1, 1]} : vector<1x256xf32> to vector<1x222xf32>
    %38 = arith.maximumf %34, %37 : vector<1x222xf32>
    %39 = vector.extract_strided_slice %5 {offsets = [0, 34], sizes = [4, 222], strides = [1, 1]} : vector<4x256xf32> to vector<4x222xf32>
    %c32 = arith.constant 32 : index
    %c0_17 = arith.constant 0 : index
    %40 = vector.load %arg7[%c32, %c0_17] : memref<36x222xf32, #tpu.memory_space<vmem>>, vector<4x222xf32>
    tpu.vector_store %arg7[%c32, %c0_17], %39 {strides = array<i32>} : memref<36x222xf32, #tpu.memory_space<vmem>>, vector<4x222xf32>,
    %41 = vector.extract_strided_slice %7 {offsets = [0, 34], sizes = [1, 222], strides = [1, 1]} : vector<1x256xf32> to vector<1x222xf32>
    %42 = arith.maximumf %38, %41 : vector<1x222xf32>
    %c0_18 = arith.constant 0 : index
    %c0_19 = arith.constant 0 : index
    %43 = vector.load %arg3[%c0_18, %c0_19] : memref<8x36xf32, #tpu.memory_space<vmem>>, vector<8x36xf32>
    %c0_20 = arith.constant 0 : index
    %c0_21 = arith.constant 0 : index
    %44 = vector.load %arg7[%c0_20, %c0_21] : memref<36x222xf32, #tpu.memory_space<vmem>>, vector<36x222xf32>
    %cst = arith.constant dense<0.000000e+00> : vector<8x222xf32>
    %45 = tpu.matmul %43, %44, %cst {dimension_numbers = #tpu.dot_dimension_numbers<[1], [0], [0], [1], [0, 0, 1, 1], [], []>} : vector<8x36xf32>, vector<36x222xf32>, vector<8x222xf32> -> vector<8x222xf32>
    %c0_22 = arith.constant 0 : index
    %c0_23 = arith.constant 0 : index
    %46 = vector.load %arg4[%c0_22, %c0_23] : memref<8x1xf32, #tpu.memory_space<vmem>>, vector<8x1xf32>
    %47 = vector.broadcast %46 : vector<8x1xf32> to vector<8x222xf32>
    %48 = arith.addf %45, %47 : vector<8x222xf32>
    %c0_24 = arith.constant 0 : index
    %c0_25 = arith.constant 0 : index
    %c0_26 = arith.constant 0 : index
    %49 = vector.load %arg5[%c0_24, %c0_25, %c0_26] : memref<1x8x222xf32, #tpu.memory_space<vmem>>, vector<1x8x222xf32>
    %50 = vector.shape_cast %49 : vector<1x8x222xf32> to vector<8x222xf32>
    %51 = vector.shape_cast %48 : vector<8x222xf32> to vector<1x8x222xf32>
    tpu.vector_store %arg5[%c0_24, %c0_25, %c0_26], %51 {strides = array<i32>} : memref<1x8x222xf32, #tpu.memory_space<vmem>>, vector<1x8x222xf32>,
    %c0_27 = arith.constant 0 : index
    %c0_28 = arith.constant 0 : index
    %c0_29 = arith.constant 0 : index
    %52 = vector.load %arg6[%c0_27, %c0_28, %c0_29] : memref<1x1x222xf32, #tpu.memory_space<vmem>>, vector<1x1x222xf32>
    %53 = vector.shape_cast %52 : vector<1x1x222xf32> to vector<1x222xf32>
    %54 = vector.shape_cast %42 : vector<1x222xf32> to vector<1x1x222xf32>
    tpu.vector_store %arg6[%c0_27, %c0_28, %c0_29], %54 {strides = array<i32>} : memref<1x1x222xf32, #tpu.memory_space<vmem>>, vector<1x1x222xf32>,
    return
  }
  func.func @transform_0(%arg0: i32) -> (i32, i32, i32) {
    %c0_i32 = arith.constant 0 : i32
    %c0_i32_0 = arith.constant 0 : i32
    %c0_i32_1 = arith.constant 0 : i32
    return %arg0, %c0_i32, %c0_i32_0 : i32, i32, i32
  }
  func.func @transform_1(%arg0: i32) -> (i32, i32, i32) {
    %c0_i32 = arith.constant 0 : i32
    %c0_i32_0 = arith.constant 0 : i32
    %c0_i32_1 = arith.constant 0 : i32
    return %arg0, %c0_i32, %c0_i32_0 : i32, i32, i32
  }
  func.func @transform_2(%arg0: i32) -> (i32, i32) {
    %c0_i32 = arith.constant 0 : i32
    %c0_i32_0 = arith.constant 0 : i32
    %c0_i32_1 = arith.constant 0 : i32
    return %c0_i32, %c0_i32_0 : i32, i32
  }
  func.func @transform_3(%arg0: i32) -> (i32, i32) {
    %c0_i32 = arith.constant 0 : i32
    %c0_i32_0 = arith.constant 0 : i32
    %c0_i32_1 = arith.constant 0 : i32
    return %c0_i32, %c0_i32_0 : i32, i32
  }
  func.func @transform_4(%arg0: i32) -> (i32, i32, i32) {
    %c0_i32 = arith.constant 0 : i32
    %c0_i32_0 = arith.constant 0 : i32
    %c0_i32_1 = arith.constant 0 : i32
    return %arg0, %c0_i32, %c0_i32_0 : i32, i32, i32
  }
  func.func @transform_5(%arg0: i32) -> (i32, i32, i32) {
    %c0_i32 = arith.constant 0 : i32
    %c0_i32_0 = arith.constant 0 : i32
    %c0_i32_1 = arith.constant 0 : i32
    return %arg0, %c0_i32, %c0_i32_0 : i32, i32, i32
  }
}

</mosaic_0001>

<bundles_post_ra>
// kernel: tpu_custom_call.1
= control target key start
LH: loop header
LB: loop body
LE: loop exit
PB: predicated region body
PF: predicated region fallthrough
CT: control target
= control target key end

     0   :  { %11 = vsyncpa [#allocation4], 0  ;;  %s1188_s0 = inlined_call_operand.hbm [shape: f32[2,4,256], index: 0, kind: input, shape index: {}]   ;;  %s1189_s1 = inlined_call_operand.vmem [shape: f32[2,1,256], index: 1, kind: input, shape index: {}]   ;;  %s1190_s2 = inlined_call_operand.vmem [shape: f32[8,36], index: 2, kind: input, shape index: {}]   ;;  %s1191_s3 = inlined_call_operand.vmem [shape: f32[8,1], index: 3, kind: input, shape index: {}]   ;;  %s1192_s4 = inlined_call_operand.hbm [shape: f32[2,8,222], index: 4, kind: output, shape index: {0}]   ;;  %s1193_s5 = inlined_call_operand.hbm [shape: f32[2,1,222], index: 5, kind: output, shape index: {1}]  }
   0x1   :  { %13 = vsyncpa [#allocation4 + $0x1], 0 }
   0x2   :  { %14 = vsyncpa [#allocation5], 0 }
   0x3   :  { %16 = vsyncpa [#allocation5 + $0x1], 0 }
   0x4   :  { %17 = vsyncpa [#allocation8], 0 }
   0x5   :  { %19 = vsyncpa [#allocation8 + $0x1], 0  ;;  %s941_s18 = smov 0   ;;  %s943_s19 = smov 0  }
   0x6   :  { %s945_s20 = smov 0   ;;  %s947_s21 = smov 0  }
   0x7 LB: > { %s962_s22 = sadd.s32 4294967295, %s896_s21   ;;  %s673_s23 = sadd.s32 4294967294, %s896_s21   ;;  %s896_s21 = sphi %s947_s21, %s1208_s21   ;;  %s892_s20 = sphi %s945_s20, %s1207_s20   ;;  %s888_s19 = sphi %s943_s19, %s1206_s19   ;;  %s884_s18 = sphi %s941_s18, %s1205_s18  }
   0x8   : > { %s966_s24 = sadd.s32 1, %s896_s21   ;;  %s32_s25 = sadd.s32 1, %s892_s20 }
   0x9   : > { %s29_s26 = ssub.s32 %s896_s21, %s966_s24  ;;  %p39_p0 = scmp.ne.s32.totalorder %s892_s20, %s888_s19 }
   0xa   : > { %p30_p1 = scmp.eq.s32.totalorder %s29_s26, 0  ;;  %p40_p2 = scmp.eq.s32.totalorder %s896_s21, 0 }
   0xb   : > { %p45_p3 = scmp.ne.s32.totalorder %s888_s19, %s884_s18  ;;  %p46_p4 = scmp.eq.s32.totalorder %s962_s22, 0 }
   0xc   : > { %s978_s27 = scalar_select %p30_p1, %s892_s20, %s32_s25  }
   0xd   : > { %p980_p5 = por %p40_p2, %p39_p0  ;;  %p984_p6 = por %p46_p4, %p45_p3 }
   0xe   : > { %p137_p7 = scmp.eq.s32.totalorder %s962_s22, 1  ;;  %p143_p8 = scmp.eq.s32.totalorder %s673_s23, 1 }
   0xf   : > { %p723_p10 = scmp.lt.s32.totalorder %s896_s21, 2  ;;  %s195_s7 = sand.u32 1, %s892_s20  }
  0x10   : > { %p991_p11 = por %p137_p7, %p39_p0  ;;  %p995_p12 = por %p143_p8, %p45_p3 }
  0x11   : > { %s695_s8 = sshll.u32 %s896_s21, 7  ;;  %s676_s9 = sshll.u32 %s195_s7, 3 }
  0x12   : > { %s1197_s30 = scalar_select %p991_p11, 1, 0 }
  0x13   : > { %s1198_s6 = scalar_select %p995_p12, 1, 0 }
  0x14   : > { %s1004_s12 = scalar_lea.hbm %s1188_s0, %s695_s8  ;;  %s199_s13 = scalar_lea.vmem [#allocation3], %s676_s9 }
  0x15   : > { %s207_s14 = sshll.u32 %s199_s13, 4  ;;  %p1008_p13 = pnand %p723_p10, %p980_p5  ;;  %s1012_s14 = int_to_ptr.vmem [resolvable:$true] %s207_s14 }
  0x16   : > { %s196_s16 = scalar_lea.sflag [#allocation4], %s195_s7  ;;  %s768_s17 = scalar_lea.hbm %s1004_s12, 128 }
  0x17   : > { %p769_p2 = scmp.ne.s32.totalorder %s1004_s12, %s768_s17  ;;  %p770_p3 = pneg %p1008_p13 }
  0x18   : > { %s773_s26 = scalar_lea.hbm %s1188_s0, 256  ;;  %p774_p5 = scmp.lt.u32.totalorder %s1004_s12, %s1188_s0 }
  0x19   : > { %p771_p4 = pnand %p770_p3, %p769_p2  ;;  %p775_p8 = scmp.lt.u32.totalorder %s773_s26, %s768_s17 }
  0x1a   : > { %p777_p9 = scmp.lt.u32.totalorder %s768_s17, %s1004_s12 }
  0x1b   : > { %p772_p7 = pneg %p771_p4  ;;  %p776_p10 = por %p775_p8, %p774_p5 }
  0x1d   : > { %p778_p0 = por %p777_p9, %p776_p10 }
  0x1f   : > { %p779_p1 = pnand %p778_p0, %p772_p7 }
  0x21   : > { %782 = shalt.err (!%p779_p1)
}
  0x22   : > { %s783_s7 = scalar_lea.vmem %s1012_s14, 128  ;;  %s898_s9 = smov [#allocation3]  }
  0x23   : > { %p784_p2 = scmp.ne.s32.totalorder %s1012_s14, %s783_s7  ;;  %s788_s10 = sshll.u32 %s898_s9, 4  ;;  %s789_s10 = int_to_ptr.vmem [resolvable:$false] %s788_s10 }
  0x24   : > { %s790_s11 = scalar_lea.vmem %s789_s10, 256  ;;  %p791_p11 = scmp.lt.s32.totalorder %s1012_s14, %s789_s10 }
  0x25   : > { %p786_p4 = pnand %p784_p2, %p770_p3  ;;  %p792_p5 = scmp.lt.s32.totalorder %s790_s11, %s783_s7 }
  0x27   : > { %p787_p12 = pneg %p786_p4  ;;  %p793_p8 = por %p792_p5, %p791_p11 }
  0x29   : > { %p794_p9 = pnand %p793_p8, %p787_p12 }
  0x2b   : > { %797 = shalt.err (!%p794_p9)
}
  0x2c   : > { %715 = dma.hbm_to_vmem [thread:$0]  (!%p1008_p13), %s1004_s12, 128, %s1012_s14, %s196_s16  }
  0x2d   : > { %p1200_p0 = scmp.lt.s32.totalorder %s896_s21, 3  ;;  %p1201_p1 = scmp.ge.s32.totalorder %s896_s21, 1 }
  0x2f   : > { %p220_p3 = pnand %p1201_p1, %p1200_p0 }
  0x30   : > { %s1046_s13 = sand.u32 (!%p220_p3), 1, %s888_s19  }
  0x31   : > { %223 = sbr.rel (%p220_p3) target bundleno = 454 (0x1c6), region = 36  ;;  %s680_s17 = sshll.u32 (!%p220_p3), %s1046_s13, 3 }
  0x32   : > { %s226_s23 = scalar_lea.sflag (!%p220_p3), [#allocation4], %s1046_s13  ;;  %s229_s25 = scalar_lea.vmem (!%p220_p3), [#allocation3], %s680_s17 }
  0x38   : > { %871 = dma.done.wait (%p984_p6), %s226_s23, 128  }
  0x39   : > { %873 = vsyncadd (%p984_p6), %s226_s23, 4294967168  ;;  %p265_p11 = scmp.lt.s32.totalorder %s962_s22, 1  ;;  %v272_v0 = vlaneseq  ;;  %v269_v7 = vld [vmem:[%s229_s25] sm:$0xff]  ;;  %vm287_vm0 = vcmask 764928   ;;  %s899_s29 = smov 126   ;;  %v906_v12 = vmov 0.0  }
  0x3a   : > { %s900_s28 = smov 127   ;;  %s901_s8 = smov 112   ;;  %511 = vmatprep.mubr.f32.mxu0 %v906_v12  ;;  %v908_v13 = vmov 0   ;;  %v430_v14 = vld [vmem:[%s1191_s3] sm:$0xff]  ;;  %vm299_vm1 = vcmask 769028   ;;  %vm294_vm2 = vcmask 1039360  }
  0x3b   : > { %s266_s12 = scalar_select %p265_p11, %s962_s22, 1  ;;  %v273_v1 = vshrl.u32 %v272_v0, 7  ;;  %767 = vset.pattern.permute.xlu0 %v908_v13  ;;  %vm327_vm3 = vcmask 916480   ;;  %vm311_vm4 = vcmask 1031168   ;;  %vm359_vm5 = vcmask 900096  }
  0x3c   : > { %s902_s7 = smov 111   ;;  %s903_s9 = smov 110   ;;  %vm343_vm6 = vcmask 908288   ;;  %vm375_vm7 = vcmask 785408   ;;  %vm391_vm8 = vcmask 777216   ;;  %vm407_vm9 = vcmask 769024  }
  0x3d   : > { %s683_s14 = sshll.u32 %s266_s12, 1  ;;  %v274_v2 = vsub.s32 0, %v273_v1  ;;  %v278_v3 = vsub.s32 1, %v273_v1  ;;  %s904_s10 = smov 96   ;;  %vm440_vm10 = vcmask 1043456   ;;  %v419_v1 = vld [vmem:[%s1190_s2] sm:$0xff] }
  0x3e   : > { %s268_s26 = scalar_lea.vmem %s1189_s1, %s683_s14  ;;  %s905_s11 = smov 95   ;;  %vm436_vm11 = vcmask 293888   ;;  %vm522_vm12 = vcmp.lt.s32.totalorder %v272_v0, 222 }
  0x3f   : > { %v1060_v4 = vld [vmem:[%s268_s26] sm:$0x3]  ;;  %s907_s17 = smov 94   ;;  %s682_s15 = sshll.u32 %s1046_s13, 1 }
  0x40   : > { %v275_v5 = vrot.slane %v1060_v4, %v274_v2  ;;  %v279_v6 = vrot.slane %v1060_v4, %v278_v3  ;;  %s264_s16 = scalar_lea.vmem [#allocation7], %s682_s15  ;;  %s697_s26 = sshll.u32 %s962_s22, 5 }
  0x41   : > { %p1202_p12 = scmp.ne.s32.totalorder %s1197_s30, 0 }
  0x42   : > { %v280_v8 = vcombine.low %v275_v5, %v279_v6 }
  0x44   : > { %v282_v9 = vmul.f32 %v280_v8, %v269_v7 }
  0x46   : > { %307 = vrot.lane.b32.xlu1 %v282_v9, %s899_s29  ;;  %286 = vst [vmem:[#allocation2] sm:$0xf] %v282_v9  ;;  %292 = vrot.lane.b32.xlu0 %v282_v9, %s900_s28  ;;  %v284_v10 = vcombine.high %v282_v9, %v282_v9  ;;  %v289_v11 = vcombine.low %v282_v9, %v282_v9 }
  0x48   : > { %288 = vst.msk [vmem:[#allocation2 + $0x8] sm:$0xf] %vm287_vm0, %v284_v10 }
  0x4a   : > { %325 = vrot.lane.b32.xlu1 %v282_v9, %s901_s8  ;;  %339 = vrot.lane.b32.xlu0 %v282_v9, %s902_s7 }
  0x4e   : > { %357 = vrot.lane.b32.xlu1 %v282_v9, %s903_s9  ;;  %290 = vrot.lane.b32.xlu0 %v289_v11, %s900_s28 }
  0x52   : > { %323 = vrot.lane.b32.xlu0 %v289_v11, %s901_s8  ;;  %309 = vrot.lane.b32.xlu1 %v284_v10, %s899_s29 }
  0x56   : > { %355 = vrot.lane.b32.xlu0 %v289_v11, %s903_s9  ;;  %341 = vrot.lane.b32.xlu1 %v284_v10, %s902_s7 }
  0x5a   : > { %371 = vrot.lane.b32.xlu0 %v282_v9, %s904_s10  ;;  %373 = vrot.lane.b32.xlu1 %v284_v10, %s904_s10 }
  0x5e   : > { %387 = vrot.lane.b32.xlu0 %v289_v11, %s905_s11  ;;  %389 = vrot.lane.b32.xlu1 %v282_v9, %s905_s11 }
  0x62   : > { %403 = vrot.lane.b32.xlu0 %v282_v9, %s907_s17  ;;  %405 = vrot.lane.b32.xlu1 %v284_v10, %s907_s17 }
  0x66   : > { %317 = vrot.lane.b32.xlu1 %v1060_v4, %s899_s29  ;;  %301 = vrot.lane.b32.xlu0 %v1060_v4, %s900_s28  ;;  %s559_s29 = sshll.u32 %s264_s16, 4  ;;  %s560_s29 = int_to_ptr.vmem [resolvable:$true] %s559_s29 }
  0x6a   : > { %349 = vrot.lane.b32.xlu1 %v1060_v4, %s902_s7  ;;  %333 = vrot.lane.b32.xlu0 %v1060_v4, %s901_s8  ;;  %s1118_s7 = scalar_lea.hbm %s1193_s5, %s697_s26 }
  0x6e   : > { %381 = vrot.lane.b32.xlu1 %v1060_v4, %s904_s10  ;;  %365 = vrot.lane.b32.xlu0 %v1060_v4, %s903_s9  ;;  %s531_s9 = scalar_lea.sflag [#allocation8], %s1046_s13  ;;  %s798_s10 = scalar_lea.vmem %s560_s29, 32 }
  0x6f   : > { %p799_p6 = scmp.ne.s32.totalorder %s560_s29, %s798_s10 }
  0x71   : > { %p800_p13 = pnand %p799_p6, %p1202_p12 }
  0x72   : > { %397 = vrot.lane.b32.xlu1 %v1060_v4, %s905_s11  ;;  %433 = vperm.xlu0 %767, %v430_v14   ;;  %s909_s11 = smov [#allocation7]  }
  0x73   : > { %p801_p7 = pneg %p800_p13 }
  0x76   : > { %413 = vrot.lane.b32.xlu1 %v1060_v4, %s907_s17  ;;  %s802_s17 = sshll.u32 %s909_s11, 4  ;;  %s803_s17 = int_to_ptr.vmem [resolvable:$false] %s802_s17 }
  0x77   : > { %s804_s23 = scalar_lea.vmem %s803_s17, 64  ;;  %p805_p10 = scmp.lt.s32.totalorder %s560_s29, %s803_s17 }
  0x78   : > { %p806_p2 = scmp.lt.s32.totalorder %s804_s23, %s798_s10 }
  0x7a   : > { %p807_p4 = por %p806_p2, %p805_p10 }
  0x7c   : > { %p808_p5 = pnand %p807_p4, %p801_p7 }
  0xb8   : > { %v308_v15 = vpop.permute.xlu1 %307  ;;  %v293_v16 = vpop.permute.xlu0 %292 }
  0xb9   : > { %300 = vst.msk [vmem:[#allocation2 + $0x8] sm:$0xf0] %vm299_vm1, %v293_v16 }
  0xbc   : > { %v326_v17 = vpop.permute.xlu1 %325  ;;  %v340_v18 = vpop.permute.xlu0 %339 }
  0xbd   : > { %332 = vst.msk [vmem:[#allocation2 + $0x18] sm:$0xf0] %vm299_vm1, %v326_v17 }
  0xc0   : > { %v358_v19 = vpop.permute.xlu1 %357  ;;  %v291_v20 = vpop.permute.xlu0 %290  ;;  %v421_v32 = vld [vmem:[#allocation2 + $0x8] sm:$0xff] }
  0xc1   : > { %364 = vst.msk [vmem:[#allocation2 + $0x28] sm:$0xf0] %vm299_vm1, %v358_v19  ;;  %v295_v21 = vsel %vm294_vm2, %v291_v20, %v293_v16 }
  0xc2   : > { %298 = vst [vmem:[#allocation2] sm:$0xf0] %v295_v21 }
  0xc4   : > { %v324_v22 = vpop.permute.xlu0 %323  ;;  %v310_v23 = vpop.permute.xlu1 %309 }
  0xc5   : > { %v328_v24 = vsel %vm327_vm3, %v324_v22, %v326_v17  ;;  %v312_v25 = vsel %vm311_vm4, %v308_v15, %v310_v23  ;;  %316 = vst.msk [vmem:[#allocation2 + $0x18] sm:$0xf] %vm287_vm0, %v310_v23 }
  0xc6   : > { %331 = vst [vmem:[#allocation2 + $0x10] sm:$0xf0] %v328_v24  ;;  %315 = vst [vmem:[#allocation2 + $0x10] sm:$0xf] %v312_v25 }
  0xc8   : > { %v356_v26 = vpop.permute.xlu0 %355  ;;  %v342_v27 = vpop.permute.xlu1 %341 }
  0xc9   : > { %v360_v28 = vsel %vm359_vm5, %v356_v26, %v358_v19  ;;  %v344_v29 = vsel %vm343_vm6, %v340_v18, %v342_v27  ;;  %348 = vst.msk [vmem:[#allocation2 + $0x28] sm:$0xf] %vm287_vm0, %v342_v27  ;;  %v420_v36 = vld [vmem:[#allocation2] sm:$0xff] }
  0xca   : > { %363 = vst [vmem:[#allocation2 + $0x20] sm:$0xf0] %v360_v28  ;;  %347 = vst [vmem:[#allocation2 + $0x20] sm:$0xf] %v344_v29 }
  0xcc   : > { %v372_v30 = vpop.permute.xlu0 %371  ;;  %v374_v31 = vpop.permute.xlu1 %373  ;;  %v423_v33 = vld [vmem:[#allocation2 + $0x18] sm:$0xff] }
  0xcd   : > { %v376_v34 = vsel %vm375_vm7, %v372_v30, %v374_v31  ;;  %380 = vst.msk [vmem:[#allocation2 + $0x38] sm:$0xf] %vm287_vm0, %v374_v31  ;;  %v698_v35 = vpack.c.bf16 %v423_v33, %v421_v32  ;;  %v422_v37 = vld [vmem:[#allocation2 + $0x10] sm:$0xff] }
  0xce   : > { %379 = vst [vmem:[#allocation2 + $0x30] sm:$0xf] %v376_v34  ;;  %v700_v38 = vpack.c.bf16 %v422_v37, %v420_v36 }
  0xcf   : > { %699 = vmatprep.subr.bf16.mxu0 %v698_v35 }
  0xd0   : > { %v388_v39 = vpop.permute.xlu0 %387  ;;  %v390_v40 = vpop.permute.xlu1 %389  ;;  %701 = vmatpush1.bf16.msra.mxu0 %v700_v38  ;;  %v425_v45 = vld [vmem:[#allocation2 + $0x28] sm:$0xff] }
  0xd1   : > { %v392_v41 = vsel %vm391_vm8, %v388_v39, %v390_v40  ;;  %396 = vst.msk [vmem:[#allocation2 + $0x38] sm:$0xf0] %vm299_vm1, %v390_v40  ;;  %v424_v50 = vld [vmem:[#allocation2 + $0x20] sm:$0xff] }
  0xd2   : > { %395 = vst [vmem:[#allocation2 + $0x30] sm:$0xf0] %v392_v41 }
  0xd4   : > { %v404_v42 = vpop.permute.xlu0 %403  ;;  %v406_v43 = vpop.permute.xlu1 %405 }
  0xd5   : > { %v408_v44 = vsel %vm407_vm9, %v404_v42, %v406_v43  ;;  %412 = vst.msk [vmem:[#allocation2 + $0x48] sm:$0xf] %vm287_vm0, %v406_v43 }
  0xd6   : > { %411 = vst [vmem:[#allocation2 + $0x40] sm:$0xf] %v408_v44 }
  0xd8   : > { %v427_v46 = vld [vmem:[#allocation2 + $0x38] sm:$0xff]  ;;  %v318_v47 = vpop.permute.xlu1 %317  ;;  %v302_v48 = vpop.permute.xlu0 %301 }
  0xd9   : > { %v702_v49 = vpack.c.bf16 %v427_v46, %v425_v45  ;;  %v426_v51 = vld [vmem:[#allocation2 + $0x30] sm:$0xff]  ;;  %v319_v52 = vrot.slane %v318_v47, 1  ;;  %v303_v53 = vrot.slane %v302_v48, 1 }
  0xda   : > { %v704_v54 = vpack.c.bf16 %v426_v51, %v424_v50 }
  0xdb   : > { %703 = vmatprep.subr.bf16.mxu0 %v702_v49  ;;  %v320_v55 = vsel %vm311_vm4, %v318_v47, %v319_v52  ;;  %v304_v56 = vsel %vm294_vm2, %v302_v48, %v303_v53 }
  0xdc   : > { %705 = vmatpush1.bf16.msra.mxu0 %v704_v54  ;;  %v429_v57 = vld [vmem:[#allocation2 + $0x48] sm:$0xf]  ;;  %v306_v58 = vmax.f32 %v1060_v4, %v304_v56  ;;  %v350_v59 = vpop.permute.xlu1 %349  ;;  %v334_v60 = vpop.permute.xlu0 %333 }
  0xdd   : > { %684 = vmatprep.subr.msk.mxu0 %vm440_vm10, %v429_v57  ;;  %v428_v61 = vld [vmem:[#allocation2 + $0x40] sm:$0xf]  ;;  %v351_v62 = vrot.slane %v350_v59, 1  ;;  %v335_v63 = vrot.slane %v334_v60, 1 }
  0xde   : > { %v322_v2 = vmax.f32 %v306_v58, %v320_v55 }
  0xdf   : > { %v352_v3 = vsel %vm343_vm6, %v350_v59, %v351_v62  ;;  %v336_v5 = vsel %vm327_vm3, %v334_v60, %v335_v63 }
  0xe0   : > { %685 = vmatpush1.msk.msra.mxu0 %vm440_vm10, %v428_v61  ;;  %v338_v4 = vmax.f32 %v322_v2, %v336_v5  ;;  %v382_v6 = vpop.permute.xlu1 %381  ;;  %v366_v7 = vpop.permute.xlu0 %365 }
  0xe1   : > { %686 = vmatmul.mubr.msk.f32.vlgmr.msra.gmra.mrb[0].mxu0 %vm436_vm11, %v419_v1  ;;  %v383_v8 = vrot.slane %v382_v6, 1  ;;  %v367_v9 = vrot.slane %v366_v7, 1 }
  0xe2   : > { %v354_v10 = vmax.f32 %v338_v4, %v352_v3 }
  0xe3   : > { %v384_v11 = vsel %vm375_vm7, %v382_v6, %v383_v8  ;;  %v368_v12 = vsel %vm359_vm5, %v366_v7, %v367_v9 }
  0xe4   : > { %v370_v13 = vmax.f32 %v354_v10, %v368_v12  ;;  %v398_v14 = vpop.permute.xlu1 %397 }
  0xe5   : > { %v399_v15 = vrot.slane %v398_v14, 1 }
  0xe6   : > { %v386_v16 = vmax.f32 %v370_v13, %v384_v11 }
  0xe7   : > { %v400_v17 = vsel %vm391_vm8, %v398_v14, %v399_v15 }
  0xe8   : > { %v402_v18 = vmax.f32 %v386_v16, %v400_v17  ;;  %v414_v19 = vpop.permute.xlu1 %413 }
  0xe9   : > { %v415_v20 = vrot.slane %v414_v19, 1 }
  0xeb   : > { %v416_v21 = vsel %vm407_vm9, %v414_v19, %v415_v20 }
  0xec   : > { %v418_v22 = vmax.f32 %v402_v18, %v416_v21 }
  0xee   : > { %524 = vst.msk [vmem:[%s264_s16] sm:$0x3] %vm522_vm12, %v418_v22 }
  0xef   : > { %811 = shalt.err (!%p808_p5)
}
  0xf0   : > { %s812_s25 = scalar_lea.hbm %s1118_s7, 32  ;;  %s816_s15 = scalar_lea.hbm %s1193_s5, 64 }
  0xf1   : > { %p813_p8 = scmp.ne.s32.totalorder %s1118_s7, %s812_s25  ;;  %p817_p1 = scmp.lt.u32.totalorder %s1118_s7, %s1193_s5 }
  0xf2   : > { %p818_p3 = scmp.lt.u32.totalorder %s816_s15, %s812_s25  ;;  %p820_p6 = scmp.lt.u32.totalorder %s812_s25, %s1118_s7 }
  0xf3   : > { %p814_p9 = pnand %p813_p8, %p1202_p12 }
  0xf4   : > { %p819_p11 = por %p818_p3, %p817_p1 }
  0xf5   : > { %p815_p0 = pneg %p814_p9 }
  0xf6   : > { %p821_p13 = por %p820_p6, %p819_p11 }
  0xf8   : > { %p822_p7 = pnand %p821_p13, %p815_p0 }
  0xfa   : > { %825 = shalt.err (!%p822_p7)
}
  0xfb   : > { %709 = dma.vmem_to_hbm [thread:$0]  (%p1202_p12), %s560_s29, 32, %s1118_s7, %s531_s9   ;;  %v434_v0 = vpop.permute.xlu0 %433 }
  0xfc   : > { %s681_s28 = sshll.u32 %s1046_s13, 4  ;;  %s696_s8 = sshll.u32 %s962_s22, 8 }
  0xfd   : > { %s257_s10 = scalar_lea.vmem [#allocation6], %s681_s28  ;;  %s1143_s25 = scalar_lea.hbm %s1192_s4, %s696_s8 }
  0xfe   : > { %s545_s11 = sshll.u32 %s257_s10, 4  ;;  %s526_s22 = scalar_lea.sflag [#allocation5], %s1046_s13  ;;  %s1145_s11 = int_to_ptr.vmem [resolvable:$true] %s545_s11 }
  0xff   : > { %s826_s29 = scalar_lea.vmem %s1145_s11, 256  ;;  %s910_s7 = smov [#allocation6]  }
 0x100   : > { %p827_p10 = scmp.ne.s32.totalorder %s1145_s11, %s826_s29  ;;  %s830_s9 = sshll.u32 %s910_s7, 4  ;;  %s831_s9 = int_to_ptr.vmem [resolvable:$false] %s830_s9 }
 0x101   : > { %s832_s12 = scalar_lea.vmem %s831_s9, 512  ;;  %p833_p5 = scmp.lt.s32.totalorder %s1145_s11, %s831_s9 }
 0x102   : > { %p828_p2 = pnand %p827_p10, %p1202_p12  ;;  %p834_p8 = scmp.lt.s32.totalorder %s832_s12, %s826_s29 }
 0x104   : > { %p829_p4 = pneg %p828_p2  ;;  %p835_p9 = por %p834_p8, %p833_p5 }
 0x106   : > { %p836_p0 = pnand %p835_p9, %p829_p4 }
 0x1b4   : > { %v513_v23 = vpop.f32.mrb[0].mxu0 }
 0x1b5   : > { %v514_v24 = vadd.f32 %v513_v23, %v434_v0  ;;  %v515_v25 = vpop.f32.mrb[1].mxu0 }
 0x1b6   : > { %v516_v26 = vadd.f32 %v515_v25, %v434_v0 }
 0x1b7   : > { %518 = vst [vmem:[%s257_s10] sm:$0xff] %v514_v24 }
 0x1b8   : > { %519 = vst.msk [vmem:[%s257_s10 + $0x8] sm:$0xff] %vm407_vm9, %v516_v26 }
 0x1b9   : > { %839 = shalt.err (!%p836_p0)
}
 0x1ba   : > { %s840_s13 = scalar_lea.hbm %s1143_s25, 256  ;;  %s844_s16 = scalar_lea.hbm %s1192_s4, 512 }
 0x1bb   : > { %p841_p1 = scmp.ne.s32.totalorder %s1143_s25, %s840_s13  ;;  %p845_p6 = scmp.lt.u32.totalorder %s1143_s25, %s1192_s4 }
 0x1bc   : > { %p846_p13 = scmp.lt.u32.totalorder %s844_s16, %s840_s13  ;;  %p848_p10 = scmp.lt.u32.totalorder %s840_s13, %s1143_s25 }
 0x1bd   : > { %p842_p3 = pnand %p841_p1, %p1202_p12 }
 0x1be   : > { %p847_p7 = por %p846_p13, %p845_p6 }
 0x1bf   : > { %p843_p11 = pneg %p842_p3 }
 0x1c0   : > { %p849_p2 = por %p848_p10, %p847_p7 }
 0x1c2   : > { %p850_p4 = pnand %p849_p2, %p843_p11 }
 0x1c4   : > { %853 = shalt.err (!%p850_p4)
}
 0x1c5   : > { %708 = dma.vmem_to_hbm [thread:$0]  (%p1202_p12), %s1145_s11, 256, %s1143_s25, %s526_s22  }
 0x1c6 PF: > { %s571_s8 = sand.u32 1, %s884_s18   ;;  %p1203_p5 = scmp.ne.s32.totalorder %s1198_s6, 0 }
 0x1c7   : > { %p1204_p8 = scmp.ge.s32.totalorder %s896_s21, 2  ;;  %s572_s10 = scalar_lea.sflag [#allocation5], %s571_s8 }
 0x1c9   : > { %p717_p9 = pnand %p1204_p8, %p1203_p5 }
 0x1cb   : > { %875 = dma.done.wait (!%p717_p9), %s572_s10, 256  }
 0x1cc   : > { %877 = vsyncadd (!%p717_p9), %s572_s10, 4294967040  ;;  %s581_s17 = scalar_lea.sflag [#allocation8], %s571_s8 }
 0x1cd   : > { %879 = dma.done.wait (!%p717_p9), %s581_s17, 32  }
 0x1ce   : > { %881 = vsyncadd (!%p717_p9), %s581_s17, 4294967264  ;;  %p22_p12 = scmp.ge.s32.totalorder %s966_s24, 4   ;;  %s1205_s18 = smov %s888_s19 }
 0x1cf   : > { %s1206_s19 = smov %s892_s20  ;;  %s1207_s20 = smov %s978_s27 }
 0x1d0   : > { %s1208_s21 = smov %s966_s24  ;;  %24 = sbr.rel (!%p22_p12) target bundleno = 7 (0x7), region = 101 }
 0x1d7   :  { %586 = vsyncpa [#allocation4], 1 }
 0x1d8   :  { %588 = vsyncpa [#allocation4 + $0x1], 1 }
 0x1d9   :  { %589 = vsyncpa [#allocation5], 1 }
 0x1da   :  { %591 = vsyncpa [#allocation5 + $0x1], 1 }
 0x1db   :  { %592 = vsyncpa [#allocation8], 1 }
 0x1dc   :  { %594 = vsyncpa [#allocation8 + $0x1], 1 }

</bundles_post_ra>
